<compile_context>
chip_gen: v5e
topology: v5e:2x2
jax: 0.10.0
libtpu: 0.0.40
codegen_flags: <defaults>
</compile_context>

<pallas_src>
import jax
import jax.numpy as jnp
from jax.experimental import pallas as pl
from jax.experimental.pallas import tpu as pltpu


def linear_kernel(x_ref, w_ref, b_ref, o_ref):
    # x_ref: [B, IN] (VMEM), w_ref: [OUT=1, IN] (VMEM), b_ref: [1] (SMEM scalar)
    prod = x_ref[...] * w_ref[...]                   # VPU: [B, IN] * [1, IN] -> [B, IN]
    acc = jnp.sum(prod, axis=-1, keepdims=True)      # XLU lane reduce -> [B, 1]
    o_ref[...] = (acc + b_ref[0]).astype(o_ref.dtype)


def dummy_model_forward(x, weight, bias):
    """Pallas equivalent of torch.nn.Linear(10, 1).forward.

    x:      [B, 10] float32
    weight: [1, 10] float32 (PyTorch layout [out_features, in_features])
    bias:   [1]     float32
    returns [B, 1]  float32
    """
    B, IN = x.shape
    OUT = weight.shape[0]

    return pl.pallas_call(
        linear_kernel,
        out_shape=jax.ShapeDtypeStruct((B, OUT), x.dtype),
        in_specs=[
            pl.BlockSpec(memory_space=pltpu.MemorySpace.VMEM),   # x, whole array
            pl.BlockSpec(memory_space=pltpu.MemorySpace.VMEM),   # weight, whole array
            pl.BlockSpec(memory_space=pltpu.MemorySpace.SMEM),   # bias scalar
        ],
        out_specs=pl.BlockSpec(memory_space=pltpu.MemorySpace.VMEM),
    )(x, weight, bias)


if __name__ == "__main__":
    key = jax.random.PRNGKey(0)
    kx, kw, kb = jax.random.split(key, 3)

    B, IN, OUT = 8, 10, 1

    # Deterministic parameter init (mimics nn.Linear's uniform(-1/sqrt(IN), 1/sqrt(IN)))
    bound = 1.0 / jnp.sqrt(jnp.float32(IN))
    weight = jax.random.uniform(kw, (OUT, IN), jnp.float32, -bound, bound)
    bias = jax.random.uniform(kb, (OUT,), jnp.float32, -bound, bound)

    x = jax.random.normal(kx, (B, IN), jnp.float32)

    y = dummy_model_forward(x, weight, bias)
    jax.block_until_ready(y)

    # Cross-check against plain JAX reference of the PyTorch semantics.
    y_ref = x @ weight.T + bias
    assert y.shape == (B, OUT)
    assert jnp.allclose(y, y_ref, atol=1e-5, rtol=1e-5)

    print("KERNEL_OK")
</pallas_src>

<mosaic_0001>
module attributes {stable_mosaic.version = 11 : i64} {
  func.func @linear_kernel(%arg0: memref<8x10xf32, #tpu.memory_space<vmem>>, %arg1: memref<1x10xf32, #tpu.memory_space<vmem>>, %arg2: memref<1xf32, #tpu.memory_space<smem>>, %arg3: memref<8x1xf32, #tpu.memory_space<vmem>>) attributes {dimension_semantics = [], scalar_prefetch = 0 : i64, scratch_operands = 0 : i64, tpu.core_type = #tpu.core_type<tc>} {
    %c0 = arith.constant 0 : index
    %c0_0 = arith.constant 0 : index
    %0 = vector.load %arg0[%c0, %c0_0] : memref<8x10xf32, #tpu.memory_space<vmem>>, vector<8x10xf32>
    %c0_1 = arith.constant 0 : index
    %c0_2 = arith.constant 0 : index
    %1 = vector.load %arg1[%c0_1, %c0_2] : memref<1x10xf32, #tpu.memory_space<vmem>>, vector<1x10xf32>
    %2 = vector.broadcast %1 : vector<1x10xf32> to vector<8x10xf32>
    %3 = arith.mulf %0, %2 : vector<8x10xf32>
    %cst = arith.constant dense<0.000000e+00> : vector<8xf32>
    %4 = vector.multi_reduction <add>, %3, %cst [1] : vector<8x10xf32> to vector<8xf32>
    %5 = vector.shape_cast %4 : vector<8xf32> to vector<8x1xf32>
    %c0_3 = arith.constant 0 : index
    %6 = memref.load %arg2[%c0_3] : memref<1xf32, #tpu.memory_space<smem>>
    %7 = vector.broadcast %6 : f32 to vector<8x1xf32>
    %8 = arith.addf %5, %7 : vector<8x1xf32>
    %c0_4 = arith.constant 0 : index
    %c0_5 = arith.constant 0 : index
    %9 = vector.load %arg3[%c0_4, %c0_5] : memref<8x1xf32, #tpu.memory_space<vmem>>, vector<8x1xf32>
    tpu.vector_store %arg3[%c0_4, %c0_5], %8 {strides = array<i32>} : memref<8x1xf32, #tpu.memory_space<vmem>>, vector<8x1xf32>,
    return
  }
}

</mosaic_0001>

<bundles_post_ra>
// kernel: tpu_custom_call.1
= control target key start
LH: loop header
LB: loop body
LE: loop exit
PB: predicated region body
PF: predicated region fallthrough
CT: control target
= control target key end

     0   :  { %9 = vsyncpa [#allocation4], 0  ;;  %s77_s15 = smov [#allocation3]   ;;  %s110_s0 = inlined_call_operand.hbm [shape: f32[8,10], index: 0, kind: input, shape index: {}]   ;;  %s111_s1 = inlined_call_operand.vmem [shape: f32[1,10], index: 1, kind: input, shape index: {}]   ;;  %s112_s2 = inlined_call_operand.<no memory space> [shape: f32[1], index: 2, kind: input, shape index: {}]   ;;  %s113_s3 = inlined_call_operand.vmem [shape: f32[8,1], index: 3, kind: output, shape index: {}]  }
   0x1   :  { %s15_s14 = sshll.u32 %s110_s0, 4  ;;  %s17_s16 = sshll.u32 %s77_s15, 4  ;;  %s16_s14 = int_to_ptr.hbm [resolvable:$true] %s15_s14  ;;  %s18_s16 = int_to_ptr.vmem [resolvable:$true] %s17_s16 }
   0x2   :  { %20 = dma.hbm_to_vmem [thread:$0]  %s16_s14, 128, %s18_s16, [#allocation4]  }
   0x3   :  { %75 = dma.done.wait [#allocation4], 128  }
   0x4   :  { %76 = vsyncadd [#allocation4], 4294967168  ;;  %v29_v0 = vld [vmem:[#allocation3] sm:$0xff]  ;;  %vm35_vm0 = vcmask 80896   ;;  %v40_v4 = vstv %s112_s2  ;;  %vm42_vm1 = vcmask 7168  }
   0x5   :  { %v50_v1 = vld [vmem:[%s111_s1] ss:$0 sm:$0xff] }
   0x6   :  { %v34_v2 = vmul.f32 %v50_v1, %v29_v0 }
   0x8   :  { %v36_v3 = vsel %vm35_vm0, %v34_v2, 0.0 }
   0x9   :  { %37 = vadd.xlane.f32.xlu0 %v36_v3 }
  0x7c   :  { %v38_v5 = vpop.xlane.xlu0 %37 }
  0x7d   :  { %v41_v6 = vadd.f32 %v40_v4, %v38_v5 }
  0x7f   :  { %43 = vst.msk [vmem:[%s113_s3] sm:$0xff] %vm42_vm1, %v41_v6 }
  0x80   :  { %48 = vsyncpa [#allocation4], 1 }

</bundles_post_ra>
